<compile_context>
chip_gen: v6e
topology: v6e:2x2x1
jax: 0.10.0
libtpu: 0.0.40
codegen_flags: <defaults>
</compile_context>

<pallas_src>
import jax
import jax.numpy as jnp
from jax import lax
from jax.experimental import pallas as pl
from jax.experimental.pallas import tpu as pltpu


def _round_up(a: int, b: int) -> int:
    return (a + b - 1) // b * b


def _largest_divisor_tile(n: int, cap: int) -> int:
    """Largest multiple of 128 that divides n and is <= cap (n is a mult of 128)."""
    best = 128
    c = 128
    while c <= min(n, cap):
        if n % c == 0:
            best = c
        c += 128
    return best


# ---------------------------------------------------------------------------
# Kernel 1: K-tiled fused QKV projection  (qkv = x @ [Wq.T*scale | Wk.T | Wv.T])
# bf16 operands, f32 accumulator, bf16 output.
# ---------------------------------------------------------------------------
def _qkv_proj_kernel(x_ref, w_ref, qkv_ref, acc_ref):
    @pl.when(pl.program_id(2) == 0)
    def _init():
        acc_ref[...] = jnp.zeros_like(acc_ref)

    acc_ref[...] += jnp.dot(
        x_ref[...], w_ref[...], preferred_element_type=jnp.float32
    )

    @pl.when(pl.program_id(2) == pl.num_programs(2) - 1)
    def _finalize():
        qkv_ref[...] = acc_ref[...].astype(qkv_ref.dtype)


# ---------------------------------------------------------------------------
# Kernel 2: flash-style causal attention, triangular grid (no dead steps),
# online softmax in f32, bf16 MXU operands.
# ---------------------------------------------------------------------------
def _flash_causal_kernel(qi_tab_ref, ki_tab_ref, q_ref, k_ref, v_ref, o_ref,
                         m_sc, l_sc, acc_sc):
    t = pl.program_id(0)
    qi = qi_tab_ref[t]
    ki = ki_tab_ref[t]

    @pl.when(ki == 0)
    def _init():
        m_sc[...] = jnp.full_like(m_sc, -jnp.inf)
        l_sc[...] = jnp.zeros_like(l_sc)
        acc_sc[...] = jnp.zeros_like(acc_sc)

    def _scores():
        # q @ k.T without an explicit in-kernel transpose; bf16 in, f32 out.
        return lax.dot_general(
            q_ref[...], k_ref[...],
            dimension_numbers=(((1,), (1,)), ((), ())),
            preferred_element_type=jnp.float32,
        )

    def _update(s):
        # s: (blk_q, blk_k) f32 scores (already scaled; -inf where masked).
        m_prev = m_sc[...]
        m_new = jnp.maximum(m_prev, jnp.max(s, axis=-1, keepdims=True))
        alpha = jnp.exp(m_prev - m_new)
        p = jnp.exp(s - m_new)                                   # f32 (EUP)
        l_sc[...] = alpha * l_sc[...] + jnp.sum(p, axis=-1, keepdims=True)
        acc_sc[...] = alpha * acc_sc[...] + jnp.dot(
            p.astype(v_ref.dtype), v_ref[...],                   # bf16 x bf16
            preferred_element_type=jnp.float32,
        )
        m_sc[...] = m_new

    @pl.when(ki < qi)        # strictly-below-diagonal block: fully visible
    def _off_diag():
        _update(_scores())

    @pl.when(ki == qi)       # diagonal block: only place the mask is applied
    def _diag_and_finalize():
        s = _scores()
        bq, bk = s.shape
        span = (lax.broadcasted_iota(jnp.int32, (bq, bk), 0)
                - lax.broadcasted_iota(jnp.int32, (bq, bk), 1))
        _update(jnp.where(span >= 0, s, -jnp.inf))

        # ki == qi is the last contributing step for this q tile; finalize.
        inv_l = pl.reciprocal(l_sc[...], approx=True)
        inv_l = inv_l * (2.0 - l_sc[...] * inv_l)   # Newton step -> ~f32 exact
        o_ref[...] = (acc_sc[...] * inv_l).astype(o_ref.dtype)


# ---------------------------------------------------------------------------
# Wrapper
# ---------------------------------------------------------------------------
def masked_attention_v1(x, wq, wk, wv, *, block_size: int = 256):
    """Pallas TPU forward of MaskedAttentionV1 (qkv_bias=False).

    x: (S, d_in); wq/wk/wv: (d_out, d_in) PyTorch-layout weights.
    Returns (S, d_out) float32.
    """
    f32, bf16 = jnp.float32, jnp.bfloat16
    S, d_in = x.shape
    d_out = wq.shape[0]

    blk = block_size if S >= block_size else _round_up(S, 8)
    s_pad = _round_up(S, blk)
    d_in_pad = _round_up(d_in, 128)
    d_pad = _round_up(d_out, 128)
    n_blk = s_pad // blk

    # Fused + pre-transposed + zero-padded weights; 1/sqrt(d_out) folded into Wq.
    scale = 1.0 / jnp.sqrt(jnp.asarray(d_out, f32))
    wq_t = jnp.zeros((d_in_pad, d_pad), f32).at[:d_in, :d_out].set(wq.astype(f32).T * scale)
    wk_t = jnp.zeros((d_in_pad, d_pad), f32).at[:d_in, :d_out].set(wk.astype(f32).T)
    wv_t = jnp.zeros((d_in_pad, d_pad), f32).at[:d_in, :d_out].set(wv.astype(f32).T)
    w_qkv = jnp.concatenate([wq_t, wk_t, wv_t], axis=1).astype(bf16)   # (d_in_pad, 3*d_pad)

    x_p = jnp.zeros((s_pad, d_in_pad), f32).at[:S, :d_in].set(x.astype(f32)).astype(bf16)

    # --- K-tiled fused QKV projection (bf16 operands, f32 accumulation) ----
    bm = blk
    bk = _largest_divisor_tile(d_in_pad, 512)
    bn = _largest_divisor_tile(3 * d_pad, 512)

    qkv = pl.pallas_call(
        _qkv_proj_kernel,
        out_shape=jax.ShapeDtypeStruct((s_pad, 3 * d_pad), bf16),
        grid=(s_pad // bm, (3 * d_pad) // bn, d_in_pad // bk),
        in_specs=[
            pl.BlockSpec((bm, bk), lambda i, j, k: (i, k)),
            pl.BlockSpec((bk, bn), lambda i, j, k: (k, j)),
        ],
        out_specs=pl.BlockSpec((bm, bn), lambda i, j, k: (i, j)),
        scratch_shapes=[pltpu.VMEM((bm, bn), f32)],
        compiler_params=pltpu.CompilerParams(
            dimension_semantics=("parallel", "parallel", "arbitrary")),
    )(x_p, w_qkv)

    # --- flash-style causal attention on a triangular grid -----------------
    # Scalar-prefetched (qi, ki) tables enumerate only the lower-triangular
    # block pairs, ordered so all ki steps of a q tile are consecutive (the
    # output / q block index stays constant across a segment -> single
    # writeback, no q re-fetch).
    qi_list, ki_list = [], []
    for qi in range(n_blk):
        for ki in range(qi + 1):
            qi_list.append(qi)
            ki_list.append(ki)
    qi_tab = jnp.asarray(qi_list, jnp.int32)
    ki_tab = jnp.asarray(ki_list, jnp.int32)
    n_steps = len(qi_list)

    # q / k / v are column blocks 0 / 1 / 2 of the fused bf16 qkv array.
    q_spec = pl.BlockSpec((blk, d_pad), lambda t, qi_t, ki_t: (qi_t[t], 0))
    k_spec = pl.BlockSpec((blk, d_pad), lambda t, qi_t, ki_t: (ki_t[t], 1))
    v_spec = pl.BlockSpec((blk, d_pad), lambda t, qi_t, ki_t: (ki_t[t], 2))
    o_spec = pl.BlockSpec((blk, d_pad), lambda t, qi_t, ki_t: (qi_t[t], 0))

    out_p = pl.pallas_call(
        _flash_causal_kernel,
        out_shape=jax.ShapeDtypeStruct((s_pad, d_pad), f32),
        grid_spec=pltpu.PrefetchScalarGridSpec(
            num_scalar_prefetch=2,
            grid=(n_steps,),
            in_specs=[q_spec, k_spec, v_spec],
            out_specs=o_spec,
            scratch_shapes=[
                pltpu.VMEM((blk, 1), f32),       # running max   m
                pltpu.VMEM((blk, 1), f32),       # running denom l
                pltpu.VMEM((blk, d_pad), f32),   # running numerator acc
            ],
        ),
        compiler_params=pltpu.CompilerParams(
            dimension_semantics=("arbitrary",)),
    )(qi_tab, ki_tab, qkv, qkv, qkv)

    return out_p[:S, :d_out]


# ---------------------------------------------------------------------------
# Pure-JAX reference, mirroring the PyTorch module exactly
# (softmax over full row, then post-softmax tril mask + renormalize).
# ---------------------------------------------------------------------------
def _reference(x, wq, wk, wv):
    q = x @ wq.T
    k = x @ wk.T
    v = x @ wv.T
    scores = q @ k.T / jnp.sqrt(jnp.float32(k.shape[-1]))
    w = jax.nn.softmax(scores, axis=-1)
    S = scores.shape[0]
    tril = jnp.tril(jnp.ones((S, S), jnp.float32))
    masked = w * tril
    masked_norm = masked / jnp.sum(masked, axis=1, keepdims=True)
    return masked_norm @ v


if __name__ == "__main__":
    key = jax.random.PRNGKey(0)

    # Configs: tiny single-block; multi-block triangular grid (2x2 -> 3 steps);
    # multi-block with both sequence and feature padding (exercises the
    # padded-key masking on the diagonal tile).
    for seq, d_in, d_out in [(8, 32, 16), (512, 32, 16), (384, 48, 80)]:
        kx, kq, kk, kv = jax.random.split(jax.random.fold_in(key, seq), 4)
        x = jax.random.normal(kx, (seq, d_in), dtype=jnp.float32)
        bound = float(d_in) ** -0.5   # nn.Linear-like uniform init, qkv_bias=False
        wq = jax.random.uniform(kq, (d_out, d_in), jnp.float32, -bound, bound)
        wk = jax.random.uniform(kk, (d_out, d_in), jnp.float32, -bound, bound)
        wv = jax.random.uniform(kv, (d_out, d_in), jnp.float32, -bound, bound)

        out = masked_attention_v1(x, wq, wk, wv)
        jax.block_until_ready(out)

        ref = _reference(x, wq, wk, wv)
        assert out.shape == (seq, d_out)
        # Tolerance loosened vs the pure-f32 version: MXU operands are bf16
        # (accumulation stays f32).
        assert jnp.allclose(out, ref, atol=5e-2, rtol=5e-2), (
            f"mismatch vs reference at seq={seq}: "
            f"max|diff|={float(jnp.max(jnp.abs(out - ref)))}"
        )

    print("KERNEL_OK")
</pallas_src>

<mosaic_0001>
module attributes {stable_mosaic.version = 11 : i64} {
  func.func @_qkv_proj_kernel(%arg0: i32, %arg1: i32, %arg2: i32, %arg3: memref<8x128xbf16, #tpu.memory_space<vmem>>, %arg4: memref<128x384xbf16, #tpu.memory_space<vmem>>, %arg5: memref<8x384xbf16, #tpu.memory_space<vmem>>, %arg6: memref<8x384xf32, #tpu.memory_space<vmem>>) attributes {dimension_semantics = [#tpu.dimension_semantics<parallel>, #tpu.dimension_semantics<parallel>, #tpu.dimension_semantics<arbitrary>], iteration_bounds = array<i64: 1, 1, 1>, scalar_prefetch = 0 : i64, scratch_operands = 1 : i64, tpu.core_type = #tpu.core_type<tc>, window_params = [{transform_indices = @transform_0, window_bounds = array<i64: 8, 128>}, {transform_indices = @transform_1, window_bounds = array<i64: 128, 384>}, {transform_indices = @transform_2, window_bounds = array<i64: 8, 384>}]} {
    %c0_i32 = arith.constant 0 : i32
    %0 = arith.cmpi eq, %arg2, %c0_i32 : i32
    %1 = arith.extui %0 : i1 to i32
    %c0_i32_0 = arith.constant 0 : i32
    %2 = arith.cmpi ne, %1, %c0_i32_0 : i32
    scf.if %2 {
      %cst_10 = arith.constant 0.000000e+00 : f32
      %12 = vector.broadcast %cst_10 : f32 to vector<8x384xf32>
      %c0_11 = arith.constant 0 : index
      %c0_12 = arith.constant 0 : index
      %13 = vector.load %arg6[%c0_11, %c0_12] : memref<8x384xf32, #tpu.memory_space<vmem>>, vector<8x384xf32>
      tpu.vector_store %arg6[%c0_11, %c0_12], %12 {strides = array<i32>} : memref<8x384xf32, #tpu.memory_space<vmem>>, vector<8x384xf32>,
    } else {
    }
    %c0 = arith.constant 0 : index
    %c0_1 = arith.constant 0 : index
    %3 = vector.load %arg6[%c0, %c0_1] : memref<8x384xf32, #tpu.memory_space<vmem>>, vector<8x384xf32>
    %c0_2 = arith.constant 0 : index
    %c0_3 = arith.constant 0 : index
    %4 = vector.load %arg3[%c0_2, %c0_3] : memref<8x128xbf16, #tpu.memory_space<vmem>>, vector<8x128xbf16>
    %c0_4 = arith.constant 0 : index
    %c0_5 = arith.constant 0 : index
    %5 = vector.load %arg4[%c0_4, %c0_5] : memref<128x384xbf16, #tpu.memory_space<vmem>>, vector<128x384xbf16>
    %cst = arith.constant dense<0.000000e+00> : vector<8x384xf32>
    %6 = tpu.matmul %4, %5, %cst {dimension_numbers = #tpu.dot_dimension_numbers<[1], [0], [0], [1], [0, 0, 1, 1], [], []>} : vector<8x128xbf16>, vector<128x384xbf16>, vector<8x384xf32> -> vector<8x384xf32>
    %7 = arith.addf %3, %6 : vector<8x384xf32>
    %c0_6 = arith.constant 0 : index
    %c0_7 = arith.constant 0 : index
    %8 = vector.load %arg6[%c0_6, %c0_7] : memref<8x384xf32, #tpu.memory_space<vmem>>, vector<8x384xf32>
    tpu.vector_store %arg6[%c0_6, %c0_7], %7 {strides = array<i32>} : memref<8x384xf32, #tpu.memory_space<vmem>>, vector<8x384xf32>,
    %c0_i32_8 = arith.constant 0 : i32
    %9 = arith.cmpi eq, %arg2, %c0_i32_8 : i32
    %10 = arith.extui %9 : i1 to i32
    %c0_i32_9 = arith.constant 0 : i32
    %11 = arith.cmpi ne, %10, %c0_i32_9 : i32
    scf.if %11 {
      %c0_10 = arith.constant 0 : index
      %c0_11 = arith.constant 0 : index
      %12 = vector.load %arg6[%c0_10, %c0_11] : memref<8x384xf32, #tpu.memory_space<vmem>>, vector<8x384xf32>
      %13 = arith.truncf %12 : vector<8x384xf32> to vector<8x384xbf16>
      %c0_12 = arith.constant 0 : index
      %c0_13 = arith.constant 0 : index
      %14 = vector.load %arg5[%c0_12, %c0_13] : memref<8x384xbf16, #tpu.memory_space<vmem>>, vector<8x384xbf16>
      tpu.vector_store %arg5[%c0_12, %c0_13], %13 {strides = array<i32>} : memref<8x384xbf16, #tpu.memory_space<vmem>>, vector<8x384xbf16>,
    } else {
    }
    return
  }
  func.func @transform_0(%arg0: i32, %arg1: i32, %arg2: i32) -> (i32, i32) {
    %c0_i32 = arith.constant 0 : i32
    return %arg0, %arg2 : i32, i32
  }
  func.func @transform_1(%arg0: i32, %arg1: i32, %arg2: i32) -> (i32, i32) {
    %c0_i32 = arith.constant 0 : i32
    return %arg2, %arg1 : i32, i32
  }
  func.func @transform_2(%arg0: i32, %arg1: i32, %arg2: i32) -> (i32, i32) {
    %c0_i32 = arith.constant 0 : i32
    return %arg0, %arg1 : i32, i32
  }
}

</mosaic_0001>

<bundles_post_ra>
// kernel: tpu_custom_call.1
= control target key start
LH: loop header
LB: loop body
LE: loop exit
PB: predicated region body
PF: predicated region fallthrough
CT: control target
= control target key end

     0   :  { %7 = vsyncpa [#allocation4], 0  ;;  %s529_s0 = inlined_call_operand.hbm [shape: bf16[8,128], index: 0, kind: input, shape index: {}]   ;;  %s530_s1 = inlined_call_operand.hbm [shape: bf16[128,384], index: 1, kind: input, shape index: {}]   ;;  %s531_s2 = inlined_call_operand.hbm [shape: bf16[8,384], index: 2, kind: output, shape index: {}]  }
   0x1   :  { %8 = vsyncpa [#allocation7], 0 }
   0x2   :  { %9 = vsyncpa [#allocation5], 0  ;;  %s497_s9 = smov [#allocation3]   ;;  %s498_s11 = smov [#allocation6]  }
   0x3   :  { %s16_s10 = sshll.u32 %s497_s9, 4  ;;  %s25_s12 = sshll.u32 %s498_s11, 4  ;;  %s17_s10 = int_to_ptr.vmem [resolvable:$true] %s16_s10  ;;  %s26_s12 = int_to_ptr.vmem [resolvable:$true] %s25_s12 }
   0x4   :  { %s439_s13 = scalar_lea.vmem %s17_s10, 64  ;;  %p444_p1 = scmp.lt.s32.totalorder %s17_s10, %s17_s10 }
   0x5   :  { %p440_p0 = scmp.ne.s32.totalorder %s17_s10, %s439_s13  ;;  %p445_p2 = scmp.lt.s32.totalorder %s439_s13, %s439_s13 }
   0x7   :  { %p446_p3 = por %p445_p2, %p444_p1 }
   0x9   :  { %p447_p4 = pnand %p446_p3, %p440_p0 }
   0xb   :  { %450 = shalt.err (!%p447_p4)
}
   0xc   :  { %19 = dma.hbm_to_vmem [thread:$0]  %s529_s0, 64, %s17_s10, [#allocation4]  }
   0xd   :  { %s459_s16 = scalar_lea.vmem %s26_s12, 3072  ;;  %p464_p6 = scmp.lt.s32.totalorder %s26_s12, %s26_s12 }
   0xe   :  { %p460_p5 = scmp.ne.s32.totalorder %s26_s12, %s459_s16  ;;  %p465_p7 = scmp.lt.s32.totalorder %s459_s16, %s459_s16 }
  0x10   :  { %p466_p8 = por %p465_p7, %p464_p6 }
  0x12   :  { %p467_p9 = pnand %p466_p8, %p460_p5 }
  0x14   :  { %470 = shalt.err (!%p467_p9)
}
  0x15   :  { %s499_s17 = smov 192   ;;  %s500_s18 = smov 12  }
  0x16   :  { %31 = dma.hbm_to_vmem [thread:$0]  %s530_s1, 3072, %s26_s12, [#allocation7], %s499_s17, %s499_s17, %s500_s18  }
  0x17   :  { %491 = dma.done.wait [#allocation4], 64  }
  0x18   :  { %492 = vsyncadd [#allocation4], 4294967232 }
  0x19   :  { %493 = dma.done.wait [#allocation7], 3072  }
  0x1a   :  { %494 = vsyncadd [#allocation7], 4294964224  ;;  %v501_v0 = vmov 0.0   ;;  %vm502_vm0 = vmmov 0   ;;  %v503_v1 = vmov 0   ;;  %s504_s0 = smov [#allocation8]  }
  0x1b   :  { %371 = vmatprep.subr.bf16.mxu1 %v501_v0  ;;  %387 = vmatprep.mubr.msk.bf16.mxu1 %vm502_vm0, %v501_v0  ;;  %v399_v2 = vld [vmem:[#allocation6 + $0xac] ss:$12 sps:$4 sm:$0xff]   ;;  %v401_v3 = vld [vmem:[#allocation6 + $0xb0] ss:$12 sps:$4 sm:$0xff]   ;;  %v402_v4 = vld [vmem:[#allocation6 + $0xa8] ss:$12 sps:$4 sm:$0xff]  }
  0x1c   :  { %242 = vmatprep.mubr.bf16.mxu0 %v503_v1  ;;  %210 = vmatprep.subr.bf16.mxu0 %v399_v2  ;;  %v403_v5 = vld [vmem:[#allocation6 + $0x94] ss:$12 sps:$4 sm:$0xff]   ;;  %v405_v6 = vld [vmem:[#allocation6 + $0x98] ss:$12 sps:$4 sm:$0xff]   ;;  %v406_v7 = vld [vmem:[#allocation6 + $0x90] ss:$12 sps:$4 sm:$0xff]  }
  0x1d   :  { %372 = vmatpush3.bf16.msra.mxu1 %v401_v3  ;;  %211 = vmatpush1.bf16.msra.mxu0 %v402_v4  ;;  %v407_v8 = vld [vmem:[#allocation6 + $0x7c] ss:$12 sps:$4 sm:$0xff]   ;;  %v409_v9 = vld [vmem:[#allocation6 + $0x80] ss:$12 sps:$4 sm:$0xff]   ;;  %v410_v10 = vld [vmem:[#allocation6 + $0x78] ss:$12 sps:$4 sm:$0xff]  }
  0x1e   :  { %373 = vmatprep.subr.bf16.mxu1 %v501_v0  ;;  %212 = vmatprep.subr.bf16.mxu0 %v403_v5  ;;  %v411_v11 = vld [vmem:[#allocation6 + $0x64] ss:$12 sps:$4 sm:$0xff]   ;;  %v413_v12 = vld [vmem:[#allocation6 + $0x68] ss:$12 sps:$4 sm:$0xff]   ;;  %v414_v13 = vld [vmem:[#allocation6 + $0x60] ss:$12 sps:$4 sm:$0xff]  }
  0x1f   :  { %v415_v14 = vld [vmem:[#allocation6 + $0x4c] ss:$12 sps:$4 sm:$0xff]   ;;  %v417_v15 = vld [vmem:[#allocation6 + $0x50] ss:$12 sps:$4 sm:$0xff]   ;;  %v418_v16 = vld [vmem:[#allocation6 + $0x48] ss:$12 sps:$4 sm:$0xff]  }
  0x20   :  { %v419_v17 = vld [vmem:[#allocation6 + $0x34] ss:$12 sps:$4 sm:$0xff]   ;;  %v421_v18 = vld [vmem:[#allocation6 + $0x38] ss:$12 sps:$4 sm:$0xff]   ;;  %v422_v19 = vld [vmem:[#allocation6 + $0x30] ss:$12 sps:$4 sm:$0xff]  }
  0x21   :  { %374 = vmatpush3.bf16.msra.mxu1 %v405_v6  ;;  %213 = vmatpush1.bf16.msra.mxu0 %v406_v7  ;;  %v423_v20 = vld [vmem:[#allocation6 + $0x1c] ss:$12 sps:$4 sm:$0xff]   ;;  %v425_v21 = vld [vmem:[#allocation6 + $0x20] ss:$12 sps:$4 sm:$0xff]   ;;  %v426_v22 = vld [vmem:[#allocation6 + $0x18] ss:$12 sps:$4 sm:$0xff]  }
  0x22   :  { %375 = vmatprep.subr.bf16.mxu1 %v501_v0  ;;  %214 = vmatprep.subr.bf16.mxu0 %v407_v8  ;;  %v427_v23 = vld [vmem:[#allocation6 + $0x4] ss:$12 sps:$4 sm:$0xff]   ;;  %v429_v24 = vld [vmem:[#allocation6 + $0x8] ss:$12 sps:$4 sm:$0xff]   ;;  %v430_v25 = vld [vmem:[#allocation6] ss:$12 sps:$4 sm:$0xff]  }
  0x23   :  { %v49_v26 = vld [vmem:[#allocation3] sm:$0xf]  ;;  %s324_s1 = sshll.u32 %s504_s0, 4  ;;  %s325_s1 = int_to_ptr.vmem [resolvable:$true] %s324_s1 }
  0x24   :  { %s471_s21 = scalar_lea.vmem %s325_s1, 192  ;;  %p476_p11 = scmp.lt.s32.totalorder %s325_s1, %s325_s1 }
  0x25   :  { %376 = vmatpush3.bf16.msra.mxu1 %v409_v9  ;;  %215 = vmatpush1.bf16.msra.mxu0 %v410_v10  ;;  %p472_p10 = scmp.ne.s32.totalorder %s325_s1, %s471_s21  ;;  %p477_p12 = scmp.lt.s32.totalorder %s471_s21, %s471_s21 }
  0x26   :  { %377 = vmatprep.subr.bf16.mxu1 %v501_v0  ;;  %216 = vmatprep.subr.bf16.mxu0 %v411_v11 }
  0x27   :  { %p478_p13 = por %p477_p12, %p476_p11 }
  0x29   :  { %378 = vmatpush3.bf16.msra.mxu1 %v413_v12  ;;  %217 = vmatpush1.bf16.msra.mxu0 %v414_v13  ;;  %p479_p0 = pnand %p478_p13, %p472_p10 }
  0x2a   :  { %379 = vmatprep.subr.bf16.mxu1 %v501_v0  ;;  %218 = vmatprep.subr.bf16.mxu0 %v415_v14 }
  0x2d   :  { %380 = vmatpush3.bf16.msra.mxu1 %v417_v15  ;;  %219 = vmatpush1.bf16.msra.mxu0 %v418_v16 }
  0x2e   :  { %381 = vmatprep.subr.bf16.mxu1 %v501_v0  ;;  %220 = vmatprep.subr.bf16.mxu0 %v419_v17 }
  0x31   :  { %382 = vmatpush3.bf16.msra.mxu1 %v421_v18  ;;  %221 = vmatpush1.bf16.msra.mxu0 %v422_v19 }
  0x32   :  { %383 = vmatprep.subr.bf16.mxu1 %v501_v0  ;;  %222 = vmatprep.subr.bf16.mxu0 %v423_v20 }
  0x35   :  { %384 = vmatpush3.bf16.msra.mxu1 %v425_v21  ;;  %223 = vmatpush1.bf16.msra.mxu0 %v426_v22 }
  0x36   :  { %385 = vmatprep.subr.bf16.mxu1 %v501_v0  ;;  %224 = vmatprep.subr.bf16.mxu0 %v427_v23 }
  0x39   :  { %386 = vmatpush3.bf16.msra.mxu1 %v429_v24  ;;  %225 = vmatpush1.bf16.msra.mxu0 %v430_v25 }
  0x3c   :  { %388 = vmatmul.mubr.bf16.vlgmr.msra.gmra.mxu1 %v49_v26  ;;  %243 = vmatmul.mubr.bf16.vlgmr.msra.gmra.mxu0 %v49_v26 }
  0xfc   :  { %v285_v27 = vpop.f32.mrf.mxu1  ;;  %v244_v29 = vpop.f32.mrf.mxu0 }
  0xfd   :  { %v361_v28 = vpack.c.bf16 %v285_v27, %v285_v27 }
  0xfe   :  { %v389_v30 = vpop.f32.mrf.mxu1  ;;  %v246_v31 = vpop.f32.mrf.mxu0 }
  0xff   :  { %317 = vst [vmem:[#allocation8 + $0x8] sm:$0xf] %v361_v28  ;;  %v360_v32 = vpack.c.bf16 %v246_v31, %v244_v29 }
 0x100   :  { %v288_v33 = vpop.f32.mrf.mxu1  ;;  %v248_v34 = vpop.f32.mrf.mxu0 }
 0x101   :  { %316 = vst [vmem:[#allocation8] sm:$0xff] %v360_v32 }
 0x102   :  { %v390_v35 = vpop.f32.mrf.mxu1  ;;  %v249_v36 = vpop.f32.mrf.mxu0 }
 0x103   :  { %482 = shalt.err (!%p479_p0)
}
 0x104   :  { %327 = dma.vmem_to_hbm [thread:$0]  %s325_s1, 192, %s531_s2, [#allocation5]  }
 0x105   :  { %495 = dma.done.wait [#allocation5], 192  }
 0x106   :  { %496 = vsyncadd [#allocation5], 4294967104 }
 0x107   :  { %331 = vsyncpa [#allocation4], 1 }
 0x108   :  { %332 = vsyncpa [#allocation7], 1 }
 0x109   :  { %333 = vsyncpa [#allocation5], 1 }

</bundles_post_ra>
